<compile_context>
chip_gen: v7x
topology: tpu7x:2x2x1
jax: 0.10.0
libtpu: 0.0.40
codegen_flags: <defaults>
</compile_context>

<pallas_src>
import jax
import jax.numpy as jnp
from jax.experimental import pallas as pl
from jax.experimental.pallas import tpu as pltpu


# ----------------------------------------------------------------------------
# tiling helpers / compiler params
# ----------------------------------------------------------------------------

_VMEM_LIMIT = None


def _vmem_limit_bytes():
    """Half of physical VMEM, clamped to [32, 96] MiB (v5e/v6e: 64 MiB, v7x: 32)."""
    global _VMEM_LIMIT
    if _VMEM_LIMIT is None:
        try:
            cap = pltpu.get_tpu_info().vmem_capacity_bytes
        except Exception:
            cap = 64 * 1024 * 1024
        _VMEM_LIMIT = int(min(max(cap // 2, 32 * 1024 * 1024), 96 * 1024 * 1024))
    return _VMEM_LIMIT


def _cparams(sem):
    return pltpu.CompilerParams(dimension_semantics=sem,
                                vmem_limit_bytes=_vmem_limit_bytes())


def _row_tile(n, target=512):
    """Row tile: full extent if small / misaligned, else a multiple of 8."""
    # TODO(synk): pad n to a multiple of 8 in glue instead of the full-array
    #             fallback for very large graphs with odd node counts.
    if n <= target or n % 8:
        return n
    t = target - (target % 8)
    while n % t:
        t -= 8
    return t


def _sq_tile(n, target=512):
    """Square (i, j) tile for the predict kernel: full or a multiple of 128."""
    if n <= target or n % 128:
        return n
    t = target
    while n % t:
        t -= 128
    return t


def _k_tile(k, target=2048):
    """K (reduction) tile and padded K for the layer kernel."""
    if k <= target:
        return k, k
    k_pad = ((k + target - 1) // target) * target
    return target, k_pad


# ----------------------------------------------------------------------------
# linear:  y = x @ W + b   (W stored pre-transposed as [in, out])
# ----------------------------------------------------------------------------

def _linear_kernel(x_ref, w_ref, b_ref, o_ref):
    acc = jnp.dot(x_ref[...], w_ref[...], preferred_element_type=jnp.float32)
    o_ref[...] = (acc + b_ref[...]).astype(o_ref.dtype)


def linear(x, w, b, out_dtype=jnp.float32):
    n, d_in = x.shape
    d_out = w.shape[1]
    tm = _row_tile(n)
    return pl.pallas_call(
        _linear_kernel,
        out_shape=jax.ShapeDtypeStruct((n, d_out), out_dtype),
        grid=(n // tm,),
        in_specs=[
            pl.BlockSpec((tm, d_in), lambda i: (i, 0)),
            pl.BlockSpec((d_in, d_out), lambda i: (0, 0)),
            pl.BlockSpec((1, d_out), lambda i: (0, 0)),
        ],
        out_specs=pl.BlockSpec((tm, d_out), lambda i: (i, 0)),
        compiler_params=_cparams(("parallel",)),
    )(x, w, b)


# ----------------------------------------------------------------------------
# fused per-layer node update (K-blocked):
#   acc_v += A_v[:, kblk] @ H[kblk, v*dim:(v+1)*dim]        (v = 0, 1, 2)
#   at last K block:
#     z_v   = relu(acc_v)
#     s_v   = relu(z_v @ W1 + b1) . w2          (attention scores, shared MLP)
#     alpha = softmax(s) over the 3 views
#     feat  = relu(prev + sum_v alpha_v * z_v)
# ----------------------------------------------------------------------------

def _layer_kernel(a0_ref, a1_ref, a2_ref, h_ref, prev_ref, w1_ref, b1_ref,
                  w2_ref, feat_ref, alpha_ref, acc0_ref, acc1_ref, acc2_ref):
    k = pl.program_id(1)

    @pl.when(k == 0)
    def _():
        acc0_ref[...] = jnp.zeros_like(acc0_ref)
        acc1_ref[...] = jnp.zeros_like(acc1_ref)
        acc2_ref[...] = jnp.zeros_like(acc2_ref)

    dim = acc0_ref.shape[1]
    h = h_ref[...]                                   # (tk, 3*dim), lane-dense
    acc0_ref[...] += jnp.dot(a0_ref[...], h[:, 0:dim],
                             preferred_element_type=jnp.float32)
    acc1_ref[...] += jnp.dot(a1_ref[...], h[:, dim:2 * dim],
                             preferred_element_type=jnp.float32)
    acc2_ref[...] += jnp.dot(a2_ref[...], h[:, 2 * dim:3 * dim],
                             preferred_element_type=jnp.float32)

    @pl.when(k == pl.num_programs(1) - 1)
    def _():
        z0 = jnp.maximum(acc0_ref[...], 0.0)
        z1 = jnp.maximum(acc1_ref[...], 0.0)
        z2 = jnp.maximum(acc2_ref[...], 0.0)

        w1 = w1_ref[...]
        b1 = b1_ref[...]
        w2 = w2_ref[...]

        def score(z):
            hz = jnp.maximum(
                jnp.dot(z, w1, preferred_element_type=jnp.float32) + b1, 0.0)
            return jnp.sum(hz * w2, axis=-1, keepdims=True)   # (tm, 1)

        s0, s1, s2 = score(z0), score(z1), score(z2)
        m = jnp.maximum(jnp.maximum(s0, s1), s2)
        e0 = jnp.exp(s0 - m)
        e1 = jnp.exp(s1 - m)
        e2 = jnp.exp(s2 - m)
        inv = pl.reciprocal(e0 + e1 + e2, approx=True)
        a0, a1, a2 = e0 * inv, e1 * inv, e2 * inv

        fused = a0 * z0 + a1 * z1 + a2 * z2
        feat_ref[...] = jnp.maximum(prev_ref[...] + fused, 0.0)
        # TODO(synk): alpha's last dim of 3 forces a masked partial store;
        #             a lane-dense (3, tm) layout needs an in-kernel transpose.
        alpha_ref[...] = jnp.concatenate([a0, a1, a2], axis=1)


def layer_update(A_views, H, prev, attn_params, tk):
    """A_views: 3 x (n, K_pad) bf16;  H: (K_pad, 3*dim) bf16;  prev: (n, dim) f32."""
    w1, b1, w2 = attn_params
    n, dim = prev.shape
    k_pad = A_views[0].shape[1]
    hidden = w1.shape[1]
    tm = _row_tile(n)
    nk = k_pad // tk

    # TODO(synk): try pipeline_mode=pl.Buffered(3) on the adjacency specs once
    #             the per-generation VMEM budget has been verified on v7x.
    a_spec = pl.BlockSpec((tm, tk), lambda i, k: (i, k))

    return pl.pallas_call(
        _layer_kernel,
        out_shape=(jax.ShapeDtypeStruct((n, dim), jnp.float32),
                   jax.ShapeDtypeStruct((n, 3), jnp.float32)),
        grid=(n // tm, nk),
        in_specs=[
            a_spec, a_spec, a_spec,
            pl.BlockSpec((tk, 3 * dim), lambda i, k: (k, 0)),
            pl.BlockSpec((tm, dim), lambda i, k: (i, 0)),
            pl.BlockSpec((dim, hidden), lambda i, k: (0, 0)),
            pl.BlockSpec((1, hidden), lambda i, k: (0, 0)),
            pl.BlockSpec((1, hidden), lambda i, k: (0, 0)),
        ],
        out_specs=(pl.BlockSpec((tm, dim), lambda i, k: (i, 0)),
                   pl.BlockSpec((tm, 3), lambda i, k: (i, 0))),
        scratch_shapes=[pltpu.VMEM((tm, dim), jnp.float32)] * 3,
        compiler_params=_cparams(("parallel", "arbitrary")),
    )(A_views[0], A_views[1], A_views[2], H, prev, w1, b1, w2)


# ----------------------------------------------------------------------------
# predict: sigmoid(D @ D^T), masked squared-error loss
#   (i, j)-tiled; per-row-block partial losses so the i axis stays "parallel"
# ----------------------------------------------------------------------------

def _predict_kernel(drow_ref, dcolt_ref, dd_ref, mask_ref, pred_ref, loss_ref):
    @pl.when(pl.program_id(1) == 0)
    def _():
        loss_ref[...] = jnp.zeros_like(loss_ref)

    logits = jnp.dot(drow_ref[...], dcolt_ref[...],
                     preferred_element_type=jnp.float32)
    pred = 1.0 / (1.0 + jnp.exp(-logits))            # exact sigmoid (parity)
    pred_ref[...] = pred
    diff = mask_ref[...].astype(jnp.float32) * (pred - dd_ref[...].astype(jnp.float32))
    loss_ref[...] += jnp.sum(diff * diff, axis=1, keepdims=True)


def predict_and_loss(drug_feat, drug_drug, mask):
    n, dim = drug_feat.shape
    t = _sq_tile(n)
    d_bf = drug_feat.astype(jnp.bfloat16)
    dt_bf = d_bf.T                      # transpose once in glue, not in-kernel
    dd_bf = drug_drug.astype(jnp.bfloat16)     # 0/1 labels: exact in bf16
    mask_bf = mask.astype(jnp.bfloat16)        # 0/1 mask: exact in bf16
    # TODO(synk): skip the full (N, N) pred writeback when only the loss is
    #             consumed by the caller.
    pred, loss_rows = pl.pallas_call(
        _predict_kernel,
        out_shape=(jax.ShapeDtypeStruct((n, n), jnp.float32),
                   jax.ShapeDtypeStruct((n, 1), jnp.float32)),
        grid=(n // t, n // t),
        in_specs=[
            pl.BlockSpec((t, dim), lambda i, j: (i, 0)),
            pl.BlockSpec((dim, t), lambda i, j: (0, j)),
            pl.BlockSpec((t, t), lambda i, j: (i, j)),
            pl.BlockSpec((t, t), lambda i, j: (i, j)),
        ],
        out_specs=(pl.BlockSpec((t, t), lambda i, j: (i, j)),
                   pl.BlockSpec((t, 1), lambda i, j: (i, 0))),
        compiler_params=_cparams(("parallel", "arbitrary")),
    )(d_bf, dt_bf, dd_bf, mask_bf)
    return pred, jnp.sum(loss_rows)


# ----------------------------------------------------------------------------
# Glue: row_normalize, parameters, forward
# ----------------------------------------------------------------------------

def row_normalize(a):
    rowsum = jnp.sum(a, axis=1, keepdims=True)
    inv = jnp.where(rowsum == 0.0, 0.0, 1.0 / rowsum)
    return a * inv


def init_linear(key, in_f, out_f, bias=True):
    k1, k2 = jax.random.split(key)
    bound = 1.0 / (in_f ** 0.5)
    # stored pre-transposed: [in_features, out_features]
    w = jax.random.uniform(k1, (in_f, out_f), jnp.float32, -bound, bound)
    b = (jax.random.uniform(k2, (1, out_f), jnp.float32, -bound, bound)
         if bias else None)
    return w, b


def init_mgnn_params(key, d, p, dim, attn_hidden=128):
    keys = jax.random.split(key, 16)
    params = {}
    fc_names = ["fc_dd", "fc_pp", "fc_dp", "fc_pd",
                "fc_dd_1", "fc_pp_1", "fc_dp_1", "fc_pd_1",
                "fc_dd_0", "fc_pp_0", "fc_dp_0", "fc_pd_0"]
    for i, name in enumerate(fc_names):
        params[name] = init_linear(keys[i], dim, dim)
    params["proj_drug"] = init_linear(keys[12], d, dim)
    params["proj_protein"] = init_linear(keys[13], p, dim)
    # Attention: Linear(dim -> hidden) + ReLU + Linear(hidden -> 1, no bias)
    aw1, ab1 = init_linear(keys[14], dim, attn_hidden)
    aw2, _ = init_linear(keys[15], attn_hidden, 1, bias=False)
    params["attn"] = (aw1, ab1, aw2.T)   # second weight kept as (1, hidden) row
    # fc_drug / fc_protein exist in the torch module but are unused in forward.
    return params


def _stack_fc(params, names):
    w = jnp.concatenate([params[n][0] for n in names], axis=1)
    b = jnp.concatenate([params[n][1] for n in names], axis=1)
    return w, b


def mgnn_forward(params, drug_feat, protein_feat, drug_aggs, protein_aggs,
                 drug_drug, mask, layer):
    dim = params["fc_dd"][0].shape[0]
    nd = drug_feat.shape[0]
    npr = protein_feat.shape[0]

    drug = linear(drug_feat, *params["proj_drug"])
    prot = linear(protein_feat, *params["proj_protein"])

    # Row-normalize adjacency matrices once, pre-sum groups sharing one fc
    # (sum_j rn(A_j) @ fc(x) == (sum_j rn(A_j)) @ fc(x)), concatenate the
    # drug-source / protein-source halves along K, cast to bf16 for the MXU
    # (accumulation stays f32 in-kernel).  Loop-invariant: built once.
    rnD = [row_normalize(a.astype(jnp.float32)) for a in drug_aggs]
    rnP = [row_normalize(a.astype(jnp.float32)) for a in protein_aggs]

    def cat_dp(d_src, p_src):
        return jnp.concatenate([d_src, p_src], axis=1).astype(jnp.bfloat16)

    A_drug = [cat_dp(rnD[14], sum(rnD[15:19])),          # view 0
              cat_dp(sum(rnD[0:5]), sum(rnD[5:9])),      # view 1
              cat_dp(sum(rnD[9:12]), sum(rnD[12:14]))]   # view 2
    A_prot = [cat_dp(sum(rnP[15:19]), rnP[14]),          # view 0
              cat_dp(sum(rnP[0:4]), sum(rnP[4:9])),      # view 1
              cat_dp(sum(rnP[9:11]), sum(rnP[11:14]))]   # view 2

    K = nd + npr
    tk, k_pad = _k_tile(K)
    if k_pad != K:
        pad_cols = lambda a: jnp.pad(a, ((0, 0), (0, k_pad - K)))
        A_drug = [pad_cols(a) for a in A_drug]
        A_prot = [pad_cols(a) for a in A_prot]

    # Stacked fc weights.  Column order per node type is [view0 | view1 | view2]
    # so each layer's H slab is two contiguous slices + one row concat.
    wd_stack, bd_stack = _stack_fc(
        params, ["fc_dd_0", "fc_dd", "fc_dd_1", "fc_dp_0", "fc_dp", "fc_dp_1"])
    wp_stack, bp_stack = _stack_fc(
        params, ["fc_pd_0", "fc_pd", "fc_pd_1", "fc_pp_0", "fc_pp", "fc_pp_1"])

    attn = params["attn"]
    drug_alpha = None
    protein_alpha = None
    for _ in range(layer):
        hd = linear(drug, wd_stack, bd_stack, out_dtype=jnp.bfloat16)  # (nd, 6*dim)
        hp = linear(prot, wp_stack, bp_stack, out_dtype=jnp.bfloat16)  # (npr, 6*dim)

        # (K, 3*dim) lane-dense H slabs; rows ordered drug-source then
        # protein-source to match the A column concatenation above.
        H_drug = jnp.concatenate([hd[:, :3 * dim], hp[:, :3 * dim]], axis=0)
        H_prot = jnp.concatenate([hd[:, 3 * dim:], hp[:, 3 * dim:]], axis=0)
        if k_pad != K:
            H_drug = jnp.pad(H_drug, ((0, k_pad - K), (0, 0)))
            H_prot = jnp.pad(H_prot, ((0, k_pad - K), (0, 0)))

        drug_new, drug_alpha = layer_update(A_drug, H_drug, drug, attn, tk)
        prot_new, protein_alpha = layer_update(A_prot, H_prot, prot, attn, tk)
        drug, prot = drug_new, prot_new

    predict, loss = predict_and_loss(drug, drug_drug, mask)
    # torch alphas have shape (N, 3, 1)
    return (predict, loss, drug_alpha[:, :, None], protein_alpha[:, :, None])


# ----------------------------------------------------------------------------
# Main
# ----------------------------------------------------------------------------

if __name__ == "__main__":
    # small, deterministic shapes
    Nd, Np = 8, 16          # number of drugs / proteins
    d_in, p_in = 16, 24     # raw drug / protein feature dims
    dim = 32                # embedding dim
    layer = 2

    key = jax.random.PRNGKey(0)
    kp, kd, kpf, *kaggs = jax.random.split(key, 4 + 38 + 2)

    params = init_mgnn_params(kp, d_in, p_in, dim)

    drug_feat = jax.random.normal(kd, (Nd, d_in), jnp.float32)
    protein_feat = jax.random.normal(kpf, (Np, p_in), jnp.float32)

    # drug aggregation matrices: indices 0-4, 9-11, 14 are (Nd,Nd);
    # 5-8, 12-13, 15-18 are (Nd,Np)
    drug_agg_shapes = ([(Nd, Nd)] * 5 + [(Nd, Np)] * 4 + [(Nd, Nd)] * 3 +
                       [(Nd, Np)] * 2 + [(Nd, Nd)] + [(Nd, Np)] * 4)
    # protein aggregation matrices: 0-3, 9-10, 15-18 are (Np,Nd);
    # 4-8, 11-14 are (Np,Np)
    prot_agg_shapes = ([(Np, Nd)] * 4 + [(Np, Np)] * 5 + [(Np, Nd)] * 2 +
                       [(Np, Np)] * 4 + [(Np, Nd)] * 4)

    drug_aggs = [jax.random.uniform(kaggs[i], s, jnp.float32)
                 for i, s in enumerate(drug_agg_shapes)]
    protein_aggs = [jax.random.uniform(kaggs[19 + i], s, jnp.float32)
                    for i, s in enumerate(prot_agg_shapes)]

    drug_drug = (jax.random.uniform(kaggs[38], (Nd, Nd)) > 0.5).astype(jnp.float32)
    mask = (jax.random.uniform(kaggs[39], (Nd, Nd)) > 0.3).astype(jnp.float32)

    predict, loss, drug_alpha, protein_alpha = mgnn_forward(
        params, drug_feat, protein_feat, drug_aggs, protein_aggs,
        drug_drug, mask, layer)

    jax.block_until_ready((predict, loss, drug_alpha, protein_alpha))

    assert predict.shape == (Nd, Nd)
    assert drug_alpha.shape == (Nd, 3, 1)
    assert protein_alpha.shape == (Np, 3, 1)
    assert jnp.isfinite(loss)
    print("KERNEL_OK")
</pallas_src>

<mosaic_0001>
module attributes {stable_mosaic.version = 11 : i64} {
  func.func @_linear_kernel(%arg0: i32, %arg1: memref<8x16xf32, #tpu.memory_space<vmem>>, %arg2: memref<16x32xf32, #tpu.memory_space<vmem>>, %arg3: memref<1x32xf32, #tpu.memory_space<vmem>>, %arg4: memref<8x32xf32, #tpu.memory_space<vmem>>) attributes {dimension_semantics = [#tpu.dimension_semantics<parallel>], iteration_bounds = array<i64: 1>, scalar_prefetch = 0 : i64, scratch_operands = 0 : i64, tpu.core_type = #tpu.core_type<tc>, window_params = [{transform_indices = @transform_0, window_bounds = array<i64: 8, 16>}, {pipeline_mode = #tpu.pipeline_mode<synchronous>, transform_indices = @transform_1, window_bounds = array<i64: 16, 32>}, {pipeline_mode = #tpu.pipeline_mode<synchronous>, transform_indices = @transform_2, window_bounds = array<i64: 1, 32>}, {transform_indices = @transform_3, window_bounds = array<i64: 8, 32>}]} {
    %c0 = arith.constant 0 : index
    %c0_0 = arith.constant 0 : index
    %0 = vector.load %arg1[%c0, %c0_0] : memref<8x16xf32, #tpu.memory_space<vmem>>, vector<8x16xf32>
    %c0_1 = arith.constant 0 : index
    %c0_2 = arith.constant 0 : index
    %1 = vector.load %arg2[%c0_1, %c0_2] : memref<16x32xf32, #tpu.memory_space<vmem>>, vector<16x32xf32>
    %cst = arith.constant dense<0.000000e+00> : vector<8x32xf32>
    %2 = tpu.matmul %0, %1, %cst {dimension_numbers = #tpu.dot_dimension_numbers<[1], [0], [0], [1], [0, 0, 1, 1], [], []>} : vector<8x16xf32>, vector<16x32xf32>, vector<8x32xf32> -> vector<8x32xf32>
    %c0_3 = arith.constant 0 : index
    %c0_4 = arith.constant 0 : index
    %3 = vector.load %arg3[%c0_3, %c0_4] : memref<1x32xf32, #tpu.memory_space<vmem>>, vector<1x32xf32>
    %4 = vector.broadcast %3 : vector<1x32xf32> to vector<8x32xf32>
    %5 = arith.addf %2, %4 : vector<8x32xf32>
    %c0_5 = arith.constant 0 : index
    %c0_6 = arith.constant 0 : index
    %6 = vector.load %arg4[%c0_5, %c0_6] : memref<8x32xf32, #tpu.memory_space<vmem>>, vector<8x32xf32>
    tpu.vector_store %arg4[%c0_5, %c0_6], %5 {strides = array<i32>} : memref<8x32xf32, #tpu.memory_space<vmem>>, vector<8x32xf32>,
    return
  }
  func.func @transform_0(%arg0: i32) -> (i32, i32) {
    %c0_i32 = arith.constant 0 : i32
    %c0_i32_0 = arith.constant 0 : i32
    return %arg0, %c0_i32 : i32, i32
  }
  func.func @transform_1(%arg0: i32) -> (i32, i32) {
    %c0_i32 = arith.constant 0 : i32
    %c0_i32_0 = arith.constant 0 : i32
    %c0_i32_1 = arith.constant 0 : i32
    return %c0_i32, %c0_i32_0 : i32, i32
  }
  func.func @transform_2(%arg0: i32) -> (i32, i32) {
    %c0_i32 = arith.constant 0 : i32
    %c0_i32_0 = arith.constant 0 : i32
    %c0_i32_1 = arith.constant 0 : i32
    return %c0_i32, %c0_i32_0 : i32, i32
  }
  func.func @transform_3(%arg0: i32) -> (i32, i32) {
    %c0_i32 = arith.constant 0 : i32
    %c0_i32_0 = arith.constant 0 : i32
    return %arg0, %c0_i32 : i32, i32
  }
}

</mosaic_0001>

<bundles_post_ra>
// kernel: tpu_custom_call.1
= control target key start
LH: loop header
LB: loop body
LE: loop exit
PB: predicated region body
PF: predicated region fallthrough
CT: control target
= control target key end

     0   :  { %8 = vsyncpa [#allocation3], 0  ;;  %s312_s0 = inlined_call_operand.hbm [shape: f32[8,16], index: 0, kind: input, shape index: {}]   ;;  %s313_s1 = inlined_call_operand.hbm [shape: f32[16,32], index: 1, kind: input, shape index: {}]   ;;  %s314_s2 = inlined_call_operand.vmem [shape: f32[1,32], index: 2, kind: input, shape index: {}]   ;;  %s315_s3 = inlined_call_operand.hbm [shape: f32[8,32], index: 3, kind: output, shape index: {}]  }
   0x1   :  { %9 = vsyncpa [#allocation6], 0 }
   0x2   :  { %10 = vsyncpa [#allocation4], 0  ;;  %s238_s12 = smov [#allocation2]   ;;  %s239_s14 = smov [#allocation5]  }
   0x3   :  { %s17_s13 = sshll.u32 %s238_s12, 4  ;;  %s26_s15 = sshll.u32 %s239_s14, 4  ;;  %s18_s13 = int_to_ptr.vmem [resolvable:$true] %s17_s13  ;;  %s266_s15 = int_to_ptr.vmem [resolvable:$true] %s26_s15 }
   0x4   :  { %s166_s18 = scalar_lea.hbm %s312_s0, 128 }
   0x5   :  { %p167_p0 = scmp.ne.s32.totalorder %s312_s0, %s166_s18  ;;  %p170_p1 = scmp.lt.u32.totalorder %s166_s18, %s312_s0 }
   0x7   :  { %p172_p2 = pnand %p170_p1, %p167_p0 }
   0x9   :  { %175 = shalt.err (!%p172_p2)
}
   0xa   :  { %s176_s23 = scalar_lea.vmem %s18_s13, 128  ;;  %p181_p4 = scmp.lt.s32.totalorder %s18_s13, %s18_s13 }
   0xb   :  { %p177_p3 = scmp.ne.s32.totalorder %s18_s13, %s176_s23  ;;  %p182_p5 = scmp.lt.s32.totalorder %s176_s23, %s176_s23 }
   0xd   :  { %p183_p6 = por %p182_p5, %p181_p4 }
   0xf   :  { %p184_p7 = pnand %p183_p6, %p177_p3 }
  0x11   :  { %187 = shalt.err (!%p184_p7)
}
  0x12   :  { %20 = dma.hbm_to_vmem [thread:$0]  %s312_s0, 128, %s18_s13, [#allocation3]  }
  0x13   :  { %s188_s28 = scalar_lea.hbm %s313_s1, 256 }
  0x14   :  { %p189_p8 = scmp.ne.s32.totalorder %s313_s1, %s188_s28  ;;  %p192_p9 = scmp.lt.u32.totalorder %s188_s28, %s313_s1 }
  0x16   :  { %p194_p10 = pnand %p192_p9, %p189_p8 }
  0x18   :  { %197 = shalt.err (!%p194_p10)
}
  0x19   :  { %s198_s6 = scalar_lea.vmem %s266_s15, 256  ;;  %p203_p12 = scmp.lt.s32.totalorder %s266_s15, %s266_s15 }
  0x1a   :  { %p199_p11 = scmp.ne.s32.totalorder %s266_s15, %s198_s6  ;;  %p204_p13 = scmp.lt.s32.totalorder %s198_s6, %s198_s6 }
  0x1c   :  { %p205_p0 = por %p204_p13, %p203_p12 }
  0x1e   :  { %p206_p1 = pnand %p205_p0, %p199_p11 }
  0x20   :  { %209 = shalt.err (!%p206_p1)
}
  0x21   :  { %s240_s0 = smov 128   ;;  %s241_s7 = smov 8  }
  0x22   :  { %32 = dma.hbm_to_vmem [thread:$0]  %s313_s1, 256, %s266_s15, [#allocation6], %s240_s0, %s240_s0, %s241_s7  }
  0x23   :  { %232 = dma.done.wait [#allocation3], 128  }
  0x24   :  { %233 = vsyncadd [#allocation3], 4294967168 }
  0x25   :  { %234 = dma.done.wait [#allocation6], 256  }
  0x26   :  { %235 = vsyncadd [#allocation6], 4294967040  ;;  %v242_v0 = vmov 0.0|0.0   ;;  %vm243_vm0 = vmmov 0   ;;  %v244_v1 = vmov 0.0   ;;  %v42_v2 = vld [vmem:[#allocation5] sm:$0xff] }
  0x27   :  { %155 = vmatprep.subr.bf16.mxu0 %v242_v0  ;;  %152 = vmatprep.mubr.msk.f32.mxu0 %vm243_vm0, %v244_v1  ;;  %v43_v3 = vld [vmem:[#allocation5 + $0x8] sm:$0xff]  ;;  %v41_v5 = vld [vmem:[#allocation2] sm:$0xff]  ;;  %vm51_vm1 = vcmask 130048   ;;  %s245_s1 = smov [#allocation7]   ;;  %vm125_vm2 = vcmask 261120  }
  0x28   :  { %v156_v4 = vpack.c.bf16 %v43_v3, %v42_v2  ;;  %v143_v6 = vld [vmem:[%s314_s2] ss:$0 sm:$0xff]  ;;  %s133_s12 = sshll.u32 %s245_s1, 4  ;;  %s134_s12 = int_to_ptr.vmem [resolvable:$true] %s133_s12 }
  0x29   :  { %s210_s13 = scalar_lea.vmem %s134_s12, 128  ;;  %p215_p3 = scmp.lt.s32.totalorder %s134_s12, %s134_s12 }
  0x2a   :  { %157 = vmatpush3.bf16.msra.mxu0 %v156_v4  ;;  %p211_p2 = scmp.ne.s32.totalorder %s134_s12, %s210_s13  ;;  %p216_p4 = scmp.lt.s32.totalorder %s210_s13, %s210_s13 }
  0x2c   :  { %p217_p5 = por %p216_p4, %p215_p3 }
  0x2d   :  { %153 = vmatmul.mubr.msk.f32.vlgmr.msra.gmra.mrb[0].mxu0 %vm51_vm1, %v41_v5 }
  0x2e   :  { %p218_p6 = pnand %p217_p5, %p211_p2 }
 0x100   :  { %v121_v7 = vpop.f32.mrb[0].mxu0 }
 0x101   :  { %v122_v8 = vadd.f32 %v143_v6, %v121_v7  ;;  %v154_v9 = vpop.f32.mrb[1].mxu0 }
 0x103   :  { %126 = vst.msk [vmem:[#allocation7] sm:$0xff] %vm125_vm2, %v122_v8 }
 0x104   :  { %221 = shalt.err (!%p218_p6)
}
 0x105   :  { %s222_s16 = scalar_lea.hbm %s315_s3, 128 }
 0x106   :  { %p223_p7 = scmp.ne.s32.totalorder %s315_s3, %s222_s16  ;;  %p226_p8 = scmp.lt.u32.totalorder %s222_s16, %s315_s3 }
 0x108   :  { %p228_p9 = pnand %p226_p8, %p223_p7 }
 0x10a   :  { %231 = shalt.err (!%p228_p9)
}
 0x10b   :  { %136 = dma.vmem_to_hbm [thread:$0]  %s134_s12, 128, %s315_s3, [#allocation4]  }
 0x10c   :  { %236 = dma.done.wait [#allocation4], 128  }
 0x10d   :  { %237 = vsyncadd [#allocation4], 4294967168 }
 0x10e   :  { %140 = vsyncpa [#allocation3], 1 }
 0x10f   :  { %141 = vsyncpa [#allocation6], 1 }
 0x110   :  { %142 = vsyncpa [#allocation4], 1 }

</bundles_post_ra>
